<compile_context>
chip_gen: v6e
topology: v6e:2x2x1
jax: 0.10.0
libtpu: 0.0.40
codegen_flags: <defaults>
</compile_context>

<pallas_src>
import functools
import math

import jax
import jax.numpy as jnp
from jax.experimental import pallas as pl
from jax.experimental.pallas import tpu as pltpu


# ----------------------------- Pallas kernels ------------------------------ #
def _embed_kernel_rowpe(x_ref, w_ref, pe_ref, o_ref):
    """Row-tile kernel; pe block rows line up 1:1 with the output rows.

    x_ref : (rt, 3*c_in)       bf16, K-stacked shifted input rows
    w_ref : (3*c_in, d_model)  bf16, conv taps stacked on the K axis (resident)
    pe_ref: (rt, d_model)      f32 positional-encoding rows for this tile
    o_ref : (rt, d_model)      output tile (f32 or bf16)
    """
    y = jnp.dot(x_ref[...], w_ref[...], preferred_element_type=jnp.float32)
    o_ref[...] = (y + pe_ref[...]).astype(o_ref.dtype)


def _embed_kernel_bcastpe(x_ref, w_ref, pe_ref, o_ref):
    """Row-tile kernel for tiles of whole batch elements (rt = k * L).

    pe_ref is the full (L, d_model) table (resident); it is broadcast over the
    k batch elements in the tile via a layout-free f32 reshape (L % 8 == 0 is
    guaranteed by the tile selection for this mode).
    """
    rt, dm = o_ref.shape
    L = pe_ref.shape[0]
    y = jnp.dot(x_ref[...], w_ref[...], preferred_element_type=jnp.float32)
    y = y.reshape(rt // L, L, dm) + pe_ref[...][None]
    o_ref[...] = y.reshape(rt, dm).astype(o_ref.dtype)


# ----------------------------- tile selection ------------------------------ #
def _divisors(n):
    ds = []
    i = 1
    while i * i <= n:
        if n % i == 0:
            ds.append(i)
            if i != n // i:
                ds.append(n // i)
        i += 1
    return sorted(ds)


def _select_row_tile(B, L, c_in, d_model, out_bytes,
                     vmem_budget=28 << 20, row_target=1024, min_steps=4):
    """Pick (row_tile, pe_mode) for the flattened (B*L, d_model) problem.

    Live-VMEM budget (28 MiB) is sized for v7x's 64 MiB physical / 32 MiB
    default-scoped VMEM (v5e/v6e have more headroom).  Aims for >= min_steps
    grid steps (two v7x TensorCores + DMA/compute overlap) and ~row_target
    rows per step (>=512-row output tiles reach ~85% of HBM roofline).
    """
    R = B * L
    w_bytes = 3 * c_in * d_model * 2
    per_row = (2 * 3 * c_in * 2             # x3 block, bf16, double-buffered
               + 2 * d_model * out_bytes    # out block, double-buffered
               + 2 * d_model * 4            # pe block, f32, double-buffered
               + d_model * 4)               # f32 matmul + pe-add intermediate
    rt_budget = max(8, (vmem_budget - w_bytes) // per_row)

    rt_goal = min(rt_budget, row_target, R)
    if R // max(rt_goal, 1) < min_steps:     # keep >= min_steps steps when possible
        rt_goal = max(8, R // min_steps)
    rt_goal = max(8, min(rt_goal, rt_budget, R))

    legal = []  # (rt, mode); every rt divides R exactly
    for d in _divisors(L):                   # pe sliced along time, rt | L
        if d % 8 == 0 and d <= rt_budget:
            legal.append((d, "slice"))
    if L % 8 == 0:                           # whole batch elements per tile
        for k in _divisors(B):
            if k * L <= rt_budget:
                legal.append((k * L, "bcast"))
    if legal:
        under = [t for t in legal if t[0] <= rt_goal]
        if under:
            return max(under, key=lambda t: (t[0], t[1] == "slice"))
        return min(legal, key=lambda t: (t[0], t[1] != "slice"))

    # Fallback (odd L with no multiple-of-8 divisor): replicate pe across rows.
    rows_div = [d for d in _divisors(R) if d % 8 == 0 and d <= rt_budget]
    under = [d for d in rows_div if d <= rt_goal]
    rt = max(under) if under else (min(rows_div) if rows_div else R)
    return rt, "rows"


# --------------------------------- wrapper --------------------------------- #
@functools.partial(jax.jit, static_argnames=("out_dtype",))
def data_embedding(x, conv_weight, pe_table, out_dtype=jnp.float32):
    """DataEmbedding forward: circular Conv1d(k=3, bias=False) + positional emb.

    x: (B, c_in, L) f32; conv_weight: (d_model, c_in, 3); pe_table: (max_len, d_model)
    returns (B, L, d_model) in `out_dtype` (f32 default; bf16 halves the
    HBM writeback of this mem-bound kernel if downstream accepts it).
    # TODO(synk): nn.Dropout(p=0.1) is stochastic in training; implemented as
    #             identity (eval-mode semantics) here.
    """
    B, c_in, L = x.shape
    d_model = conv_weight.shape[0]
    assert L <= pe_table.shape[0], "sequence length exceeds positional table max_len"
    R = B * L

    # --- glue (plain XLA on small data): circular shifts + K-stacking -------
    # y[t] = x[t-1]@W0 + x[t]@W1 + x[t+1]@W2  ->  one matmul over 3*c_in.
    x_t = jnp.transpose(x, (0, 2, 1))                                  # (B, L, c_in)
    x3 = jnp.concatenate(
        [jnp.roll(x_t, 1, axis=1), x_t, jnp.roll(x_t, -1, axis=1)], axis=-1
    ).astype(jnp.bfloat16).reshape(R, 3 * c_in)                        # (R, 3*c_in)

    # conv weight (d_model, c_in, 3) -> taps stacked on the K axis.
    w_stack = jnp.transpose(conv_weight, (2, 1, 0)).reshape(3 * c_in, d_model)
    w_stack = w_stack.astype(jnp.bfloat16)                             # (3*c_in, d_model)

    pe = pe_table[:L, :].astype(jnp.float32)                           # (L, d_model)

    out_bytes = jnp.dtype(out_dtype).itemsize
    rt, mode = _select_row_tile(B, L, c_in, d_model, out_bytes)

    if mode == "slice":
        # pe block rides along with the output rows (period = L // rt tiles).
        period = L // rt
        pe_arr = pe
        if period == 1:
            pe_spec = pl.BlockSpec((rt, d_model), lambda r: (0, 0))
        else:
            pe_spec = pl.BlockSpec((rt, d_model), lambda r: (r % period, 0))
        kernel = _embed_kernel_rowpe
    elif mode == "bcast":
        # Tiles of whole batch elements; full pe table resident (small: L*d_model).
        pe_arr = pe
        pe_spec = pl.BlockSpec((L, d_model), lambda r: (0, 0))
        kernel = _embed_kernel_bcastpe
    else:  # "rows"
        # Odd L fallback: pe replicated per row, same index map as the output.
        pe_arr = jnp.tile(pe, (B, 1))
        pe_spec = pl.BlockSpec((rt, d_model), lambda r: (r, 0))
        kernel = _embed_kernel_rowpe

    out = pl.pallas_call(
        kernel,
        out_shape=jax.ShapeDtypeStruct((R, d_model), out_dtype),
        grid_spec=pltpu.PrefetchScalarGridSpec(
            num_scalar_prefetch=0,
            grid=(R // rt,),
            in_specs=[
                pl.BlockSpec((rt, 3 * c_in), lambda r: (r, 0)),
                pl.BlockSpec((3 * c_in, d_model), lambda r: (0, 0)),   # resident taps
                pe_spec,
            ],
            out_specs=pl.BlockSpec((rt, d_model), lambda r: (r, 0)),
        ),
        compiler_params=pltpu.CompilerParams(
            dimension_semantics=("parallel",),
            vmem_limit_bytes=48 << 20),
    )(x3, w_stack, pe_arr)

    return out.reshape(B, L, d_model)


# ----------------------------- parameter setup ----------------------------- #
def make_positional_table(d_model, max_len=128):
    position = jnp.arange(max_len, dtype=jnp.float32)[:, None]
    div_term = jnp.exp(
        jnp.arange(0, d_model, 2, dtype=jnp.float32) * (-math.log(10000.0) / d_model)
    )
    pe = jnp.zeros((max_len, d_model), dtype=jnp.float32)
    pe = pe.at[:, 0::2].set(jnp.sin(position * div_term))
    pe = pe.at[:, 1::2].set(jnp.cos(position * div_term))
    return pe


def kaiming_normal_conv1d(key, d_model, c_in, ksize=3, negative_slope=0.01):
    # matches nn.init.kaiming_normal_(mode='fan_in', nonlinearity='leaky_relu')
    fan_in = c_in * ksize
    gain = math.sqrt(2.0 / (1.0 + negative_slope ** 2))
    std = gain / math.sqrt(fan_in)
    return std * jax.random.normal(key, (d_model, c_in, ksize), dtype=jnp.float32)


# -------------------------------- reference -------------------------------- #
def data_embedding_ref(x, conv_weight, pe_table):
    """Pure-JAX f32 reference: circular conv1d(k=3, pad=1) + positional embedding."""
    B, c_in, L = x.shape
    d_model = conv_weight.shape[0]
    x_pad = jnp.concatenate([x[:, :, -1:], x, x[:, :, :1]], axis=-1)   # (B, c_in, L+2)
    y = jnp.zeros((B, d_model, L), dtype=jnp.float32)
    for k in range(3):
        y = y + jnp.einsum("bct,dc->bdt", x_pad[:, :, k:k + L], conv_weight[:, :, k])
    return jnp.transpose(y, (0, 2, 1)) + pe_table[:L, :][None]


# ---------------------------------- main ----------------------------------- #
if __name__ == "__main__":
    B, c_in, L, d_model = 2, 4, 16, 32

    key = jax.random.PRNGKey(0)
    k_x, k_w = jax.random.split(key)

    x = jax.random.normal(k_x, (B, c_in, L), dtype=jnp.float32)
    conv_weight = kaiming_normal_conv1d(k_w, d_model, c_in)
    pe_table = make_positional_table(d_model, max_len=128)

    ref = data_embedding_ref(x, conv_weight, pe_table)

    # default f32-output path
    out = jax.block_until_ready(data_embedding(x, conv_weight, pe_table))
    assert out.shape == (B, L, d_model)
    assert out.dtype == jnp.float32
    # bf16 inputs to the MXU (f32 accumulation) -> loosened tolerance
    assert jnp.allclose(out, ref, atol=3e-2, rtol=3e-2), \
        float(jnp.max(jnp.abs(out - ref)))

    # optional bf16-output path (halves HBM writeback; f32 accumulate + pe add)
    out_bf16 = jax.block_until_ready(
        data_embedding(x, conv_weight, pe_table, out_dtype=jnp.bfloat16))
    assert out_bf16.shape == (B, L, d_model)
    assert out_bf16.dtype == jnp.bfloat16
    assert jnp.allclose(out_bf16.astype(jnp.float32), ref, atol=8e-2, rtol=8e-2), \
        float(jnp.max(jnp.abs(out_bf16.astype(jnp.float32) - ref)))

    print("KERNEL_OK")
</pallas_src>

<mosaic_0001>
module attributes {stable_mosaic.version = 11 : i64} {
  func.func @_embed_kernel_rowpe(%arg0: i32, %arg1: memref<8x12xbf16, #tpu.memory_space<vmem>>, %arg2: memref<12x32xbf16, #tpu.memory_space<vmem>>, %arg3: memref<8x32xf32, #tpu.memory_space<vmem>>, %arg4: memref<8x32xf32, #tpu.memory_space<vmem>>) attributes {dimension_semantics = [#tpu.dimension_semantics<parallel>], iteration_bounds = array<i64: 4>, scalar_prefetch = 0 : i64, scratch_operands = 0 : i64, tpu.core_type = #tpu.core_type<tc>, window_params = [{transform_indices = @transform_0, window_bounds = array<i64: 8, 12>}, {pipeline_mode = #tpu.pipeline_mode<synchronous>, transform_indices = @transform_1, window_bounds = array<i64: 12, 32>}, {transform_indices = @transform_2, window_bounds = array<i64: 8, 32>}, {transform_indices = @transform_3, window_bounds = array<i64: 8, 32>}]} {
    %c0 = arith.constant 0 : index
    %c0_0 = arith.constant 0 : index
    %0 = vector.load %arg1[%c0, %c0_0] : memref<8x12xbf16, #tpu.memory_space<vmem>>, vector<8x12xbf16>
    %c0_1 = arith.constant 0 : index
    %c0_2 = arith.constant 0 : index
    %1 = vector.load %arg2[%c0_1, %c0_2] : memref<12x32xbf16, #tpu.memory_space<vmem>>, vector<12x32xbf16>
    %cst = arith.constant dense<0.000000e+00> : vector<8x32xf32>
    %2 = tpu.matmul %0, %1, %cst {dimension_numbers = #tpu.dot_dimension_numbers<[1], [0], [0], [1], [0, 0, 1, 1], [], []>} : vector<8x12xbf16>, vector<12x32xbf16>, vector<8x32xf32> -> vector<8x32xf32>
    %c0_3 = arith.constant 0 : index
    %c0_4 = arith.constant 0 : index
    %3 = vector.load %arg3[%c0_3, %c0_4] : memref<8x32xf32, #tpu.memory_space<vmem>>, vector<8x32xf32>
    %4 = arith.addf %2, %3 : vector<8x32xf32>
    %c0_5 = arith.constant 0 : index
    %c0_6 = arith.constant 0 : index
    %5 = vector.load %arg4[%c0_5, %c0_6] : memref<8x32xf32, #tpu.memory_space<vmem>>, vector<8x32xf32>
    tpu.vector_store %arg4[%c0_5, %c0_6], %4 {strides = array<i32>} : memref<8x32xf32, #tpu.memory_space<vmem>>, vector<8x32xf32>,
    return
  }
  func.func @transform_0(%arg0: i32) -> (i32, i32) {
    %c0_i32 = arith.constant 0 : i32
    %c0_i32_0 = arith.constant 0 : i32
    return %arg0, %c0_i32 : i32, i32
  }
  func.func @transform_1(%arg0: i32) -> (i32, i32) {
    %c0_i32 = arith.constant 0 : i32
    %c0_i32_0 = arith.constant 0 : i32
    %c0_i32_1 = arith.constant 0 : i32
    return %c0_i32, %c0_i32_0 : i32, i32
  }
  func.func @transform_2(%arg0: i32) -> (i32, i32) {
    %c2_i32 = arith.constant 2 : i32
    %c0_i32 = arith.constant 0 : i32
    %0 = arith.cmpi eq, %c2_i32, %c0_i32 : i32
    %c1_i32 = arith.constant 1 : i32
    %1 = arith.select %0, %c1_i32, %c2_i32 : i32
    %2 = arith.remsi %arg0, %1 : i32
    %c0_i32_0 = arith.constant 0 : i32
    %3 = arith.cmpi ne, %2, %c0_i32_0 : i32
    %c0_i32_1 = arith.constant 0 : i32
    %4 = arith.cmpi slt, %2, %c0_i32_1 : i32
    %c0_i32_2 = arith.constant 0 : i32
    %5 = arith.cmpi slt, %1, %c0_i32_2 : i32
    %6 = arith.xori %4, %5 : i1
    %7 = arith.andi %6, %3 : i1
    %8 = arith.addi %2, %1 : i32
    %9 = arith.select %7, %8, %2 : i32
    %c0_i32_3 = arith.constant 0 : i32
    %c0_i32_4 = arith.constant 0 : i32
    return %9, %c0_i32_3 : i32, i32
  }
  func.func @transform_3(%arg0: i32) -> (i32, i32) {
    %c0_i32 = arith.constant 0 : i32
    %c0_i32_0 = arith.constant 0 : i32
    return %arg0, %c0_i32 : i32, i32
  }
}

</mosaic_0001>

<bundles_post_ra>
// kernel: data_embedding.1
= control target key start
LH: loop header
LB: loop body
LE: loop exit
PB: predicated region body
PF: predicated region fallthrough
CT: control target
= control target key end

     0   :  { %8 = vsyncpa [#allocation3], 0  ;;  %s677_s0 = inlined_call_operand.vmem [shape: bf16[32,12], index: 0, kind: input, shape index: {}]   ;;  %s678_s1 = inlined_call_operand.vmem [shape: bf16[12,32], index: 1, kind: input, shape index: {}]   ;;  %s679_s2 = inlined_call_operand.vmem [shape: f32[16,32], index: 2, kind: input, shape index: {}]   ;;  %s680_s3 = inlined_call_operand.hbm [shape: f32[32,32], index: 3, kind: output, shape index: {}]  }
   0x1   :  { %10 = vsyncpa [#allocation3 + $0x1], 0  ;;  %s569_s12 = smov 0   ;;  %s571_s13 = smov 0  }
   0x2   :  { %s573_s14 = smov 0   ;;  %s575_s15 = smov 0  }
   0x3 LB: > { %s590_s16 = sadd.s32 4294967295, %s544_s15   ;;  %s412_s17 = sadd.s32 4294967294, %s544_s15   ;;  %s544_s15 = sphi %s575_s15, %s686_s15   ;;  %s540_s14 = sphi %s573_s14, %s685_s14   ;;  %s536_s13 = sphi %s571_s13, %s684_s13   ;;  %s532_s12 = sphi %s569_s12, %s683_s12  }
   0x4   : > { %s594_s18 = sadd.s32 1, %s544_s15   ;;  %s120_s19 = sadd.s32 1, %s540_s14 }
   0x5   : > { %s117_s20 = ssub.s32 %s544_s15, %s594_s18  ;;  %p130_p0 = scmp.ne.s32.totalorder %s540_s14, %s536_s13 }
   0x6   : > { %p118_p1 = scmp.eq.s32.totalorder %s117_s20, 0  ;;  %p131_p2 = scmp.eq.s32.totalorder %s590_s16, 3 }
   0x7   : > { %p136_p3 = scmp.ne.s32.totalorder %s536_s13, %s532_s12  ;;  %p137_p4 = scmp.eq.s32.totalorder %s412_s17, 3 }
   0x8   : > { %s605_s21 = scalar_select %p118_p1, %s540_s14, %s120_s19  }
   0x9   : > { %p607_p5 = por %p131_p2, %p130_p0  ;;  %p611_p6 = por %p137_p4, %p136_p3 }
   0xa   : > { %p421_p7 = scmp.ge.s32.totalorder %s544_s15, 1  ;;  %p196_p8 = scmp.lt.s32.totalorder %s544_s15, 5 }
   0xc   : > { %p197_p9 = pnand %p421_p7, %p196_p8 }
   0xd   : > { %p235_p10 = scmp.lt.s32.totalorder (!%p197_p9), %s590_s16, 3  ;;  %s240_s4 = ssub.s32 (!%p197_p9), 0, %s590_s16 }
   0xe   : > { %200 = sbr.rel (%p197_p9) target bundleno = 233 (0xe9), region = 32  ;;  %s424_s5 = smin.u32 (!%p197_p9), %s590_s16, %s240_s4 }
   0xf   : > { %s242_s6 = sand.u32 (!%p197_p9), 1, %s424_s5   ;;  %p239_p11 = scmp.lt.s32.totalorder (!%p197_p9), %s590_s16, 0 }
  0x10   : > { %s243_s7 = ssub.s32 (!%p197_p9), 0, %s242_s6  ;;  %s232_s9 = sand.u32 (!%p197_p9), 1, %s536_s13  }
  0x11   : > { %s422_s11 = sshll.u32 (!%p197_p9), %s232_s9, 3  ;;  %s431_s24 = sshll.u32 (!%p197_p9), %s590_s16, 7 }
  0x12   : > { %s234_s25 = scalar_lea.vmem (!%p197_p9), [#allocation2], %s422_s11  ;;  %s636_s29 = scalar_lea.hbm (!%p197_p9), %s680_s3, %s431_s24 }
  0x13   : > { %vm281_vm0 = vcmask 1045504   ;;  %v546_v0 = vmov 0.0   ;;  %v483_v1 = vld [vmem:[%s678_s1] sm:$0x3f]   ;;  %vm547_vm1 = vmmov 0   ;;  %s236_s26 = scalar_select %p235_p10, %s590_s16, 3 }
  0x14   : > { %436 = vmatprep.subr.bf16.mxu0 %v546_v0  ;;  %438 = vmatprep.mubr.msk.bf16.mxu0 %vm547_vm1, %v546_v0  ;;  %v283_v2 = vsel %vm281_vm0, %v483_v1, 0  ;;  %vm277_vm2 = vcmask 97280   ;;  %s688_s7 = smov (!%p239_p11, %s243_s7), %s242_s6  ;;  %vm325_vm3 = vcmask 261120   ;;  %s548_s4 = smov [#allocation2]  }
  0x15   : > { %437 = vmatpush3.bf16.msra.mxu0 %v283_v2  ;;  %s423_s27 = sshll.u32 %s236_s26, 2  ;;  %p426_p12 = scmp.lt.s32.totalorder %s688_s7, 0 }
  0x16   : > { %s238_s30 = scalar_lea.vmem %s677_s0, %s423_s27  ;;  %s249_s8 = sadd.s32 2, %s688_s7 }
  0x17   : > { %v268_v3 = vld [vmem:[%s238_s30] sm:$0xf]  ;;  %s690_s8 = smov (!%p426_p12, %s249_s8), %s688_s7  ;;  %s341_s26 = sshll.u32 %s234_s25, 4  ;;  %s638_s26 = int_to_ptr.vmem [resolvable:$true] %s341_s26 }
  0x18   : > { %439 = vmatmul.mubr.msk.bf16.vlgmr.msra.gmra.mxu0 %vm277_vm2, %v268_v3  ;;  %p251_p13 = scmp.lt.s32.totalorder %s690_s8, 1  ;;  %s328_s30 = scalar_lea.sflag [#allocation3], %s232_s9 }
  0x19   : > { %s484_s16 = scalar_lea.vmem %s638_s26, 128  ;;  %s488_s5 = sshll.u32 %s548_s4, 4  ;;  %s489_s5 = int_to_ptr.vmem [resolvable:$false] %s488_s5 }
  0x1a   : > { %s692_s8 = smov (!%p251_p13, %s690_s8), 1  ;;  %p485_p0 = scmp.ne.s32.totalorder %s638_s26, %s484_s16 }
  0x1b   : > { %s427_s10 = sshll.u32 %s692_s8, 3  ;;  %s490_s6 = scalar_lea.vmem %s489_s5, 256 }
  0x1c   : > { %s254_s20 = scalar_lea.vmem %s679_s2, %s427_s10  ;;  %p486_p1 = pnand %p485_p0, %p607_p5 }
  0x1d   : > { %v271_v4 = vld [vmem:[%s254_s20] sm:$0xff]  ;;  %p491_p3 = scmp.lt.s32.totalorder %s638_s26, %s489_s5  ;;  %p492_p4 = scmp.lt.s32.totalorder %s490_s6, %s484_s16 }
  0x1e   : > { %p487_p2 = pneg %p486_p1 }
  0x1f   : > { %p493_p7 = por %p492_p4, %p491_p3 }
  0x21   : > { %p494_p8 = pnand %p493_p7, %p487_p2 }
  0xd8   : > { %v319_v5 = vpop.f32.mrf.mxu0 }
  0xd9   : > { %v320_v6 = vadd.f32 %v319_v5, %v271_v4 }
  0xda   : > { %v440_v7 = vpop.f32.mrf.mxu0 }
  0xdb   : > { %326 = vst.msk [vmem:[%s234_s25] sm:$0xff] %vm325_vm3, %v320_v6 }
  0xdc   : > { %v322_v8 = vpop.f32.mrf.mxu0 }
  0xdd   : > { %497 = shalt.err (!%p494_p8)
}
  0xde   : > { %s498_s7 = scalar_lea.hbm %s636_s29, 128  ;;  %s502_s10 = scalar_lea.hbm %s680_s3, 512 }
  0xdf   : > { %p499_p9 = scmp.ne.s32.totalorder %s636_s29, %s498_s7  ;;  %p503_p12 = scmp.lt.s32.totalorder %s636_s29, %s680_s3 }
  0xe0   : > { %p504_p13 = scmp.lt.s32.totalorder %s502_s10, %s498_s7 }
  0xe1   : > { %p500_p10 = pnand %p499_p9, %p607_p5 }
  0xe2   : > { %p505_p0 = por %p504_p13, %p503_p12 }
  0xe3   : > { %p501_p11 = pneg %p500_p10 }
  0xe5   : > { %p506_p1 = pnand %p505_p0, %p501_p11 }
  0xe7   : > { %509 = shalt.err (!%p506_p1)
}
  0xe8   : > { %442 = dma.vmem_to_hbm [thread:$0]  (%p607_p5), %s638_s26, 128, %s636_s29, %s328_s30   ;;  %v441_v9 = vpop.f32.mrf.mxu0 }
  0xe9 PF: > { %p448_p2 = scmp.ge.s32.totalorder %s544_s15, 2  ;;  %s353_s19 = sand.u32 1, %s532_s12  }
  0xea   : > { %s354_s20 = scalar_lea.sflag [#allocation3], %s353_s19 }
  0xeb   : > { %p445_p3 = pnand %p448_p2, %p611_p6 }
  0xed   : > { %p446_p4 = pneg %p445_p3 }
  0xef   : > { %527 = dma.done.wait (%p446_p4), %s354_s20, 128  }
  0xf0   : > { %529 = vsyncadd (%p446_p4), %s354_s20, 4294967168  ;;  %p13_p7 = scmp.ge.s32.totalorder %s594_s18, 6   ;;  %s683_s12 = smov %s536_s13 }
  0xf1   : > { %s684_s13 = smov %s540_s14  ;;  %s685_s14 = smov %s605_s21 }
  0xf2   : > { %s686_s15 = smov %s594_s18  ;;  %15 = sbr.rel (!%p13_p7) target bundleno = 3 (0x3), region = 70 }
  0xf7   :  { %359 = vsyncpa [#allocation3], 1 }
  0xf8   :  { %361 = vsyncpa [#allocation3 + $0x1], 1 }

</bundles_post_ra>
